<compile_context>
chip_gen: v6e
topology: v6e:2x2x1
jax: 0.10.0
libtpu: 0.0.40
codegen_flags: <defaults>
</compile_context>

<pallas_src>
import jax
import jax.numpy as jnp
from jax.experimental import pallas as pl
from jax.experimental.pallas import tpu as pltpu


def _round_up(x, m):
    return ((x + m - 1) // m) * m


def policy_net_kernel(x_ref, w1_ref, b1_ref, w2_ref, b2_ref, out_ref):
    a = out_ref.shape[-1]                                        # real action lanes

    # fc1 + ReLU (bf16 MXU inputs, f32 accumulation)
    x = x_ref[...].astype(w1_ref.dtype)                          # [TB, S]
    h = jnp.dot(x, w1_ref[...], preferred_element_type=jnp.float32)
    h = jnp.maximum(h + b1_ref[...], 0.0)                        # [TB, H_pad], f32

    # fc2 (padded action lanes get a -1e30 bias -> zero probability)
    logits = jnp.dot(h.astype(w2_ref.dtype), w2_ref[...],
                     preferred_element_type=jnp.float32)
    logits = logits + b2_ref[...]                                # [TB, A_pad], f32

    # Numerically stable softmax over the lane-dense padded action axis.
    m = jnp.max(logits, axis=-1, keepdims=True)
    e = jnp.exp(logits - m)                                      # padded lanes -> 0
    denom = jnp.sum(e, axis=-1, keepdims=True)
    probs = e / denom                                            # exact divide: rows sum to 1

    # Store only the real action lanes (narrow HBM writeback).
    out_ref[...] = probs[:, :a].astype(out_ref.dtype)


def prepare_params(w1, b1, w2, b2, *, compute_dtype=jnp.bfloat16):
    """One-time weight prep: pad hidden/action dims to 128 lanes, cast weights
    to the MXU compute dtype, and give padded action lanes a -1e30 bias.
    Call once at init; do NOT call per forward pass."""
    S, H = w1.shape
    A = w2.shape[1]
    H_pad = _round_up(H, 128)
    A_pad = _round_up(A, 128)

    w1p = jnp.zeros((S, H_pad), compute_dtype).at[:, :H].set(w1.astype(compute_dtype))
    b1p = jnp.zeros((1, H_pad), jnp.float32).at[:, :H].set(b1.astype(jnp.float32))
    w2p = jnp.zeros((H_pad, A_pad), compute_dtype).at[:H, :A].set(w2.astype(compute_dtype))
    # Padded action lanes: huge negative bias -> exp underflows to exactly 0.
    b2p = jnp.full((1, A_pad), -1e30, jnp.float32).at[:, :A].set(b2.astype(jnp.float32))
    return dict(w1=w1p, b1=b1p, w2=w2p, b2=b2p, state_dim=S,
                hidden_pad=H_pad, action_dim=A, action_pad=A_pad)


def policy_net_forward(x, params, *, block_b=1024):
    """x: [B, state_dim] float32; params from prepare_params() -> probs [B, action_dim]."""
    B, S = x.shape
    assert S == params["state_dim"]
    H_pad = params["hidden_pad"]
    A = params["action_dim"]
    A_pad = params["action_pad"]

    # Batch tile: multiple of 8 sublanes; cdiv grid with partial last block
    # (no wrapper-side batch padding pass).
    TB = min(block_b, _round_up(B, 8))
    grid_b = pl.cdiv(B, TB)
    if grid_b < 2 and B > 8:
        # v7x has 2 TensorCores: make sure the "parallel" batch axis has >= 2
        # steps for moderate/large batches so both cores get work.
        TB = _round_up(pl.cdiv(B, 2), 8)
        grid_b = pl.cdiv(B, TB)

    w_itemsize = jnp.dtype(params["w1"].dtype).itemsize
    cost = pl.CostEstimate(
        flops=2 * B * (S * H_pad + H_pad * A_pad),
        transcendentals=B * A_pad,
        bytes_accessed=(B * S * x.dtype.itemsize                      # x
                        + (S * H_pad + H_pad * A_pad) * w_itemsize    # weights
                        + (H_pad + A_pad) * 4                         # biases
                        + B * A * 4),                                 # narrow output
    )

    out = pl.pallas_call(
        policy_net_kernel,
        out_shape=jax.ShapeDtypeStruct((B, A), jnp.float32),
        grid=(grid_b,),
        in_specs=[
            pl.BlockSpec((TB, S), lambda i: (i, 0)),          # x tile (pipelined)
            pl.BlockSpec((S, H_pad), lambda i: (0, 0)),       # w1 (VMEM-resident)
            pl.BlockSpec((1, H_pad), lambda i: (0, 0)),       # b1 (resident)
            pl.BlockSpec((H_pad, A_pad), lambda i: (0, 0)),   # w2 (resident)
            pl.BlockSpec((1, A_pad), lambda i: (0, 0)),       # b2 (resident)
        ],
        out_specs=pl.BlockSpec((TB, A), lambda i: (i, 0)),    # only real action lanes
        compiler_params=pltpu.CompilerParams(
            dimension_semantics=("parallel",)),
        cost_estimate=cost,
    )(x, params["w1"], params["b1"], params["w2"], params["b2"])

    return out


def init_params(key, state_dim, hidden_dim, action_dim):
    """Deterministic synthetic init matching PyTorch nn.Linear shapes
    (weights stored transposed: [in_features, out_features])."""
    k1, k2, k3, k4 = jax.random.split(key, 4)
    bound1 = 1.0 / jnp.sqrt(state_dim)
    w1 = jax.random.uniform(k1, (state_dim, hidden_dim), jnp.float32, -bound1, bound1)
    b1 = jax.random.uniform(k2, (1, hidden_dim), jnp.float32, -bound1, bound1)
    bound2 = 1.0 / jnp.sqrt(hidden_dim)
    w2 = jax.random.uniform(k3, (hidden_dim, action_dim), jnp.float32, -bound2, bound2)
    b2 = jax.random.uniform(k4, (1, action_dim), jnp.float32, -bound2, bound2)
    return w1, b1, w2, b2


def _reference(x, w1, b1, w2, b2):
    h = jnp.maximum(x @ w1 + b1, 0.0)
    return jax.nn.softmax(h @ w2 + b2, axis=-1)


if __name__ == "__main__":
    # Small shapes consistent with the module's forward: x = [batch, state_dim]
    batch, state_dim, hidden_dim, action_dim = 2, 4, 32, 6

    key = jax.random.PRNGKey(0)
    kx, kp, kb = jax.random.split(key, 3)
    x = jax.random.normal(kx, (batch, state_dim), jnp.float32)
    w1, b1, w2, b2 = init_params(kp, state_dim, hidden_dim, action_dim)

    # One-time weight prep (padded + bf16), reused across forward calls.
    params = prepare_params(w1, b1, w2, b2)

    # Tiny-batch check (single partial block).
    probs = jax.block_until_ready(policy_net_forward(x, params))
    ref = _reference(x, w1, b1, w2, b2)
    assert probs.shape == (batch, action_dim)
    assert jnp.allclose(probs, ref, atol=2e-2, rtol=2e-2)
    assert jnp.allclose(jnp.sum(probs, axis=-1), 1.0, atol=1e-3)

    # Larger, non-multiple batch to exercise the cdiv batch grid (>= 2 steps).
    xb = jax.random.normal(kb, (300, state_dim), jnp.float32)
    probs_b = jax.block_until_ready(policy_net_forward(xb, params))
    ref_b = _reference(xb, w1, b1, w2, b2)
    assert probs_b.shape == (300, action_dim)
    assert jnp.allclose(probs_b, ref_b, atol=2e-2, rtol=2e-2)
    assert jnp.allclose(jnp.sum(probs_b, axis=-1), 1.0, atol=1e-3)

    # TODO(synk): at true actor-style batch~2, fuse with downstream action
    # sampling (or skip Pallas) — the standalone kernel only pays off for large
    # inference batches.
    print("KERNEL_OK")
</pallas_src>

<mosaic_0001>
module attributes {stable_mosaic.version = 11 : i64} {
  func.func @policy_net_kernel(%arg0: i32, %arg1: memref<8x4xf32, #tpu.memory_space<vmem>>, %arg2: memref<4x128xbf16, #tpu.memory_space<vmem>>, %arg3: memref<1x128xf32, #tpu.memory_space<vmem>>, %arg4: memref<128x128xbf16, #tpu.memory_space<vmem>>, %arg5: memref<1x128xf32, #tpu.memory_space<vmem>>, %arg6: memref<8x6xf32, #tpu.memory_space<vmem>>) attributes {dimension_semantics = [#tpu.dimension_semantics<parallel>], iteration_bounds = array<i64: 1>, scalar_prefetch = 0 : i64, scratch_operands = 0 : i64, tpu.core_type = #tpu.core_type<tc>, window_params = [{transform_indices = @transform_0, window_bounds = array<i64: 8, 4>}, {pipeline_mode = #tpu.pipeline_mode<synchronous>, transform_indices = @transform_1, window_bounds = array<i64: 4, 128>}, {pipeline_mode = #tpu.pipeline_mode<synchronous>, transform_indices = @transform_2, window_bounds = array<i64: 1, 128>}, {pipeline_mode = #tpu.pipeline_mode<synchronous>, transform_indices = @transform_3, window_bounds = array<i64: 128, 128>}, {pipeline_mode = #tpu.pipeline_mode<synchronous>, transform_indices = @transform_4, window_bounds = array<i64: 1, 128>}, {transform_indices = @transform_5, window_bounds = array<i64: 8, 6>}]} {
    %c0 = arith.constant 0 : index
    %c0_0 = arith.constant 0 : index
    %0 = vector.load %arg1[%c0, %c0_0] : memref<8x4xf32, #tpu.memory_space<vmem>>, vector<8x4xf32>
    %1 = arith.truncf %0 : vector<8x4xf32> to vector<8x4xbf16>
    %c0_1 = arith.constant 0 : index
    %c0_2 = arith.constant 0 : index
    %2 = vector.load %arg2[%c0_1, %c0_2] : memref<4x128xbf16, #tpu.memory_space<vmem>>, vector<4x128xbf16>
    %cst = arith.constant dense<0.000000e+00> : vector<8x128xf32>
    %3 = tpu.matmul %1, %2, %cst {dimension_numbers = #tpu.dot_dimension_numbers<[1], [0], [0], [1], [0, 0, 1, 1], [], []>} : vector<8x4xbf16>, vector<4x128xbf16>, vector<8x128xf32> -> vector<8x128xf32>
    %c0_3 = arith.constant 0 : index
    %c0_4 = arith.constant 0 : index
    %4 = vector.load %arg3[%c0_3, %c0_4] : memref<1x128xf32, #tpu.memory_space<vmem>>, vector<1x128xf32>
    %5 = vector.broadcast %4 : vector<1x128xf32> to vector<8x128xf32>
    %6 = arith.addf %3, %5 : vector<8x128xf32>
    %cst_5 = arith.constant 0.000000e+00 : f32
    %7 = vector.broadcast %cst_5 : f32 to vector<8x128xf32>
    %8 = arith.maximumf %6, %7 : vector<8x128xf32>
    %9 = arith.truncf %8 : vector<8x128xf32> to vector<8x128xbf16>
    %c0_6 = arith.constant 0 : index
    %c0_7 = arith.constant 0 : index
    %10 = vector.load %arg4[%c0_6, %c0_7] : memref<128x128xbf16, #tpu.memory_space<vmem>>, vector<128x128xbf16>
    %cst_8 = arith.constant dense<0.000000e+00> : vector<8x128xf32>
    %11 = tpu.matmul %9, %10, %cst_8 {dimension_numbers = #tpu.dot_dimension_numbers<[1], [0], [0], [1], [0, 0, 1, 1], [], []>} : vector<8x128xbf16>, vector<128x128xbf16>, vector<8x128xf32> -> vector<8x128xf32>
    %c0_9 = arith.constant 0 : index
    %c0_10 = arith.constant 0 : index
    %12 = vector.load %arg5[%c0_9, %c0_10] : memref<1x128xf32, #tpu.memory_space<vmem>>, vector<1x128xf32>
    %13 = vector.broadcast %12 : vector<1x128xf32> to vector<8x128xf32>
    %14 = arith.addf %11, %13 : vector<8x128xf32>
    %cst_11 = arith.constant dense<0xFF800000> : vector<8xf32>
    %15 = vector.multi_reduction <maximumf>, %14, %cst_11 [1] : vector<8x128xf32> to vector<8xf32>
    %16 = vector.shape_cast %15 : vector<8xf32> to vector<8x1xf32>
    %17 = vector.broadcast %16 : vector<8x1xf32> to vector<8x128xf32>
    %18 = arith.subf %14, %17 : vector<8x128xf32>
    %19 = math.exp %18 : vector<8x128xf32>
    %cst_12 = arith.constant dense<0.000000e+00> : vector<8xf32>
    %20 = vector.multi_reduction <add>, %19, %cst_12 [1] : vector<8x128xf32> to vector<8xf32>
    %21 = vector.shape_cast %20 : vector<8xf32> to vector<8x1xf32>
    %22 = vector.broadcast %21 : vector<8x1xf32> to vector<8x128xf32>
    %23 = arith.divf %19, %22 : vector<8x128xf32>
    %24 = vector.extract_strided_slice %23 {offsets = [0, 0], sizes = [8, 6], strides = [1, 1]} : vector<8x128xf32> to vector<8x6xf32>
    %c0_13 = arith.constant 0 : index
    %c0_14 = arith.constant 0 : index
    %25 = vector.load %arg6[%c0_13, %c0_14] : memref<8x6xf32, #tpu.memory_space<vmem>>, vector<8x6xf32>
    tpu.vector_store %arg6[%c0_13, %c0_14], %24 {strides = array<i32>} : memref<8x6xf32, #tpu.memory_space<vmem>>, vector<8x6xf32>,
    return
  }
  func.func @transform_0(%arg0: i32) -> (i32, i32) {
    %c0_i32 = arith.constant 0 : i32
    %c0_i32_0 = arith.constant 0 : i32
    return %arg0, %c0_i32 : i32, i32
  }
  func.func @transform_1(%arg0: i32) -> (i32, i32) {
    %c0_i32 = arith.constant 0 : i32
    %c0_i32_0 = arith.constant 0 : i32
    %c0_i32_1 = arith.constant 0 : i32
    return %c0_i32, %c0_i32_0 : i32, i32
  }
  func.func @transform_2(%arg0: i32) -> (i32, i32) {
    %c0_i32 = arith.constant 0 : i32
    %c0_i32_0 = arith.constant 0 : i32
    %c0_i32_1 = arith.constant 0 : i32
    return %c0_i32, %c0_i32_0 : i32, i32
  }
  func.func @transform_3(%arg0: i32) -> (i32, i32) {
    %c0_i32 = arith.constant 0 : i32
    %c0_i32_0 = arith.constant 0 : i32
    %c0_i32_1 = arith.constant 0 : i32
    return %c0_i32, %c0_i32_0 : i32, i32
  }
  func.func @transform_4(%arg0: i32) -> (i32, i32) {
    %c0_i32 = arith.constant 0 : i32
    %c0_i32_0 = arith.constant 0 : i32
    %c0_i32_1 = arith.constant 0 : i32
    return %c0_i32, %c0_i32_0 : i32, i32
  }
  func.func @transform_5(%arg0: i32) -> (i32, i32) {
    %c0_i32 = arith.constant 0 : i32
    %c0_i32_0 = arith.constant 0 : i32
    return %arg0, %c0_i32 : i32, i32
  }
}

</mosaic_0001>

<bundles_post_ra>
// kernel: tpu_custom_call.1
= control target key start
LH: loop header
LB: loop body
LE: loop exit
PB: predicated region body
PF: predicated region fallthrough
CT: control target
= control target key end

     0   :  { %10 = vsyncpa [#allocation3], 0  ;;  %s481_s0 = inlined_call_operand.hbm [shape: f32[2,4], index: 0, kind: input, shape index: {}]   ;;  %s482_s1 = inlined_call_operand.hbm [shape: bf16[4,128], index: 1, kind: input, shape index: {}]   ;;  %s483_s2 = inlined_call_operand.vmem [shape: f32[1,128], index: 2, kind: input, shape index: {}]   ;;  %s484_s3 = inlined_call_operand.hbm [shape: bf16[128,128], index: 3, kind: input, shape index: {}]   ;;  %s485_s4 = inlined_call_operand.vmem [shape: f32[1,128], index: 4, kind: input, shape index: {}]   ;;  %s486_s5 = inlined_call_operand.hbm [shape: f32[2,6], index: 5, kind: output, shape index: {}]  }
   0x1   :  { %11 = vsyncpa [#allocation6], 0 }
   0x2   :  { %12 = vsyncpa [#allocation4], 0 }
   0x3   :  { %17 = vsyncadd [#allocation3], 96  ;;  %s417_s18 = smov [#allocation5]   ;;  %s418_s20 = smov [#allocation2]  }
   0x4   :  { %s31_s19 = sshll.u32 %s417_s18, 4  ;;  %s18_s21 = sshll.u32 %s418_s20, 4  ;;  %s32_s19 = int_to_ptr.vmem [resolvable:$true] %s31_s19  ;;  %s19_s21 = int_to_ptr.vmem [resolvable:$true] %s18_s21 }
   0x5   :  { %s339_s22 = scalar_lea.vmem %s32_s19, 32  ;;  %p344_p1 = scmp.lt.s32.totalorder %s32_s19, %s32_s19 }
   0x6   :  { %p340_p0 = scmp.ne.s32.totalorder %s32_s19, %s339_s22  ;;  %p345_p2 = scmp.lt.s32.totalorder %s339_s22, %s339_s22 }
   0x8   :  { %p346_p3 = por %p345_p2, %p344_p1 }
   0xa   :  { %p347_p4 = pnand %p346_p3, %p340_p0 }
   0xc   :  { %350 = shalt.err (!%p347_p4)
}
   0xd   :  { %34 = dma.hbm_to_vmem [thread:$0]  %s482_s1, 32, %s32_s19, [#allocation6]  }
   0xe   :  { %s359_s25 = scalar_lea.vmem %s19_s21, 32  ;;  %s363_s26 = scalar_lea.vmem %s19_s21, 128 }
   0xf   :  { %p360_p5 = scmp.ne.s32.totalorder %s19_s21, %s359_s25  ;;  %p364_p6 = scmp.lt.s32.totalorder %s19_s21, %s19_s21 }
  0x10   :  { %p365_p7 = scmp.lt.s32.totalorder %s363_s26, %s359_s25 }
  0x12   :  { %p366_p8 = por %p365_p7, %p364_p6 }
  0x14   :  { %p367_p9 = pnand %p366_p8, %p360_p5 }
  0x16   :  { %370 = shalt.err (!%p367_p9)
}
  0x17   :  { %s419_s27 = smov 32   ;;  %s420_s28 = smov 2  }
  0x18   :  { %24 = dma.hbm_to_vmem [thread:$0]  %s481_s0, 32, %s19_s21, [#allocation3], %s419_s27, %s419_s27, %s420_s28  }
  0x19   :  { %s421_s6 = smov [#allocation7]  }
  0x1a   :  { %s42_s7 = sshll.u32 %s421_s6, 4  ;;  %s43_s7 = int_to_ptr.vmem [resolvable:$true] %s42_s7 }
  0x1b   :  { %s379_s1 = scalar_lea.vmem %s43_s7, 1024  ;;  %p384_p11 = scmp.lt.s32.totalorder %s43_s7, %s43_s7 }
  0x1c   :  { %p380_p10 = scmp.ne.s32.totalorder %s43_s7, %s379_s1  ;;  %p385_p12 = scmp.lt.s32.totalorder %s379_s1, %s379_s1 }
  0x1e   :  { %p386_p13 = por %p385_p12, %p384_p11 }
  0x20   :  { %p387_p0 = pnand %p386_p13, %p380_p10 }
  0x22   :  { %390 = shalt.err (!%p387_p0)
}
  0x23   :  { %s422_s8 = smov 64   ;;  %s423_s9 = smov 4  }
  0x24   :  { %48 = dma.hbm_to_vmem [thread:$0]  %s484_s3, 1024, %s43_s7, [#allocation6], %s422_s8, %s422_s8, %s423_s9  }
  0x25   :  { %411 = dma.done.wait [#allocation3], 128  }
  0x26   :  { %412 = vsyncadd [#allocation3], 4294967168 }
  0x27   :  { %413 = dma.done.wait [#allocation6], 1056  }
  0x28   :  { %414 = vsyncadd [#allocation6], 4294966240  ;;  %v424_v0 = vmov 0.0   ;;  %vm425_vm0 = vmmov 0   ;;  %vm75_vm1 = vcmask 1041408   ;;  %v61_v2 = vld [vmem:[#allocation2] sm:$0xff] }
  0x29   :  { %283 = vmatprep.subr.bf16.mxu0 %v424_v0  ;;  %285 = vmatprep.mubr.msk.bf16.mxu0 %vm425_vm0, %v424_v0  ;;  %v63_v1 = vld [vmem:[#allocation5] sm:$0x3]  ;;  %v62_v4 = vpack.c.bf16 %v61_v2, %v61_v2  ;;  %vm71_vm2 = vcmask 31744   ;;  %v320_v6 = vld [vmem:[#allocation7 + $0x30] sm:$0xff]   ;;  %v321_v7 = vld [vmem:[#allocation7 + $0x28] sm:$0xff]   ;;  %vm241_vm3 = vcmask 48128  }
  0x2a   :  { %289 = vmatprep.subr.bf16.mxu1 %v424_v0  ;;  %305 = vmatprep.mubr.msk.bf16.mxu1 %vm425_vm0, %v424_v0  ;;  %v77_v3 = vsel %vm75_vm1, %v63_v1, 0  ;;  %v319_v5 = vld [vmem:[#allocation7 + $0x38] sm:$0xff]   ;;  %v322_v8 = vld [vmem:[#allocation7 + $0x20] sm:$0xff]   ;;  %v324_v10 = vld [vmem:[#allocation7 + $0x10] sm:$0xff]  }
  0x2b   :  { %284 = vmatpush3.bf16.msra.mxu0 %v77_v3  ;;  %290 = vmatpush3.bf16.msra.mxu1 %v319_v5  ;;  %v323_v9 = vld [vmem:[#allocation7 + $0x18] sm:$0xff]   ;;  %v325_v11 = vld [vmem:[#allocation7 + $0x8] sm:$0xff]   ;;  %v326_v12 = vld [vmem:[#allocation7] sm:$0xff]  }
  0x2c   :  { %291 = vmatprep.subr.bf16.mxu1 %v424_v0  ;;  %v261_v13 = vld [vmem:[%s483_s2] ss:$0 sm:$0xff] }
  0x2d   :  { %v263_v21 = vld [vmem:[%s485_s4] ss:$0 sm:$0xff] }
  0x2e   :  { %286 = vmatmul.mubr.msk.bf16.vlgmr.msra.gmra.mxu0 %vm71_vm2, %v62_v4 }
  0x2f   :  { %292 = vmatpush3.bf16.msra.mxu1 %v320_v6 }
  0x30   :  { %293 = vmatprep.subr.bf16.mxu1 %v424_v0 }
  0x33   :  { %294 = vmatpush3.bf16.msra.mxu1 %v321_v7 }
  0x34   :  { %295 = vmatprep.subr.bf16.mxu1 %v424_v0 }
  0x37   :  { %296 = vmatpush3.bf16.msra.mxu1 %v322_v8 }
  0x38   :  { %297 = vmatprep.subr.bf16.mxu1 %v424_v0 }
  0x3b   :  { %298 = vmatpush3.bf16.msra.mxu1 %v323_v9 }
  0x3c   :  { %299 = vmatprep.subr.bf16.mxu1 %v424_v0 }
  0x3f   :  { %300 = vmatpush3.bf16.msra.mxu1 %v324_v10 }
  0x40   :  { %301 = vmatprep.subr.bf16.mxu1 %v424_v0 }
  0x43   :  { %302 = vmatpush3.bf16.msra.mxu1 %v325_v11 }
  0x44   :  { %303 = vmatprep.subr.bf16.mxu1 %v424_v0 }
  0x47   :  { %304 = vmatpush3.bf16.msra.mxu1 %v326_v12 }
  0xee   :  { %v113_v14 = vpop.f32.mrf.mxu0 }
  0xef   :  { %v114_v15 = vadd.f32 %v261_v13, %v113_v14 }
  0xf0   :  { %v287_v16 = vpop.f32.mrf.mxu0 }
  0xf1   :  { %v119_v17 = vmax.f32 %v114_v15, 0.0 }
  0xf2   :  { %v116_v18 = vpop.f32.mrf.mxu0 }
  0xf3   :  { %v120_v19 = vpack.c.bf16 %v119_v17, %v119_v17 }
  0xf4   :  { %v288_v20 = vpop.f32.mrf.mxu0 }
  0xf5   :  { %306 = vmatmul.mubr.bf16.vlgmr.msra.gmra.mxu1 %v120_v19 }
 0x1b5   :  { %v226_v22 = vpop.f32.mrf.mxu1 }
 0x1b6   :  { %v227_v23 = vadd.f32 %v263_v21, %v226_v22 }
 0x1b7   :  { %v307_v24 = vpop.f32.mrf.mxu1 }
 0x1b8   :  { %232 = vmax.xlane.f32.xlu0 %v227_v23 }
 0x1b9   :  { %v229_v25 = vpop.f32.mrf.mxu1 }
 0x1bb   :  { %v308_v26 = vpop.f32.mrf.mxu1 }
 0x241   :  { %v233_v27 = vpop.xlane.xlu0 %232 }
 0x242   :  { %v234_v28 = vsub.f32 %v227_v23, %v233_v27 }
 0x244   :  { %v235_v29 = vmul.f32 1.442695, %v234_v28 }
 0x246   :  { %327 = vpow2.f32 %v235_v29 }
 0x253   :  { %v328_v30 = vpop.eup %327 }
 0x254   :  { %237 = vadd.xlane.f32.xlu0 %v328_v30 }
 0x2dd   :  { %v238_v31 = vpop.xlane.xlu0 %237 }
 0x2de   :  { %329 = vrcp.f32 %v238_v31 }
 0x2eb   :  { %v330_v32 = vpop.eup %329 }
 0x2ec   :  { %v240_v33 = vmul.f32 %v330_v32, %v328_v30 }
 0x2ee   :  { %242 = vst.msk [vmem:[#allocation8] sm:$0xff] %vm241_vm3, %v240_v33 }
 0x2ef   :  { %247 = vsyncadd [#allocation4], 96  ;;  %s426_s2 = smov [#allocation8]  }
 0x2f0   :  { %s248_s4 = sshll.u32 %s426_s2, 4  ;;  %s249_s4 = int_to_ptr.vmem [resolvable:$true] %s248_s4 }
 0x2f1   :  { %s391_s14 = scalar_lea.vmem %s249_s4, 32  ;;  %s395_s15 = scalar_lea.vmem %s249_s4, 128 }
 0x2f2   :  { %p392_p1 = scmp.ne.s32.totalorder %s249_s4, %s391_s14  ;;  %p396_p2 = scmp.lt.s32.totalorder %s249_s4, %s249_s4 }
 0x2f3   :  { %p397_p3 = scmp.lt.s32.totalorder %s395_s15, %s391_s14 }
 0x2f5   :  { %p398_p4 = por %p397_p3, %p396_p2 }
 0x2f7   :  { %p399_p5 = pnand %p398_p4, %p392_p1 }
 0x2f9   :  { %402 = shalt.err (!%p399_p5)
}
 0x2fa   :  { %254 = dma.vmem_to_hbm [thread:$0]  %s249_s4, 32, %s486_s5, [#allocation4], %s419_s27, %s419_s27, %s420_s28  }
 0x2fb   :  { %415 = dma.done.wait [#allocation4], 128  }
 0x2fc   :  { %416 = vsyncadd [#allocation4], 4294967168 }
 0x2fd   :  { %258 = vsyncpa [#allocation3], 1 }
 0x2fe   :  { %259 = vsyncpa [#allocation6], 1 }
 0x2ff   :  { %260 = vsyncpa [#allocation4], 1 }

</bundles_post_ra>
